<compile_context>
chip_gen: v7x
topology: tpu7x:2x2x1
jax: 0.10.0
libtpu: 0.0.40
codegen_flags: <defaults>
</compile_context>

<pallas_src>
import jax
import jax.numpy as jnp
from jax import lax
from jax.experimental import pallas as pl
from jax.experimental.pallas import tpu as pltpu

_LANES = 128


def _pow_static(v, alpha: float):
    """x ** alpha with a static (trace-time) float exponent, f32 math.

    Fast paths for integer and half-integer alpha (|alpha| <= 16) avoid the
    2-transcendental exp/log path, keeping EUP pressure low on v7x.
    """
    a = float(alpha)
    if a == 0.0:
        return jnp.ones_like(v)
    if a == 1.0:
        return v
    m2 = a * 2.0
    if m2 == int(m2) and abs(a) <= 16.0:
        m = abs(int(m2))
        whole, frac = divmod(m, 2)          # v**|a| = v**whole * sqrt(v)**frac
        r = None
        if whole:
            r = lax.integer_pow(v, whole)
        if frac:
            s = jnp.sqrt(v)
            r = s if r is None else r * s
        return (1.0 / r) if a < 0.0 else r
    # General real exponent: exp(a * log(x)) on the EUP.  Matches torch.pow
    # for x > 0; NaN for negative base with non-integer exponent (same as
    # torch).
    return jnp.exp(a * jnp.log(v))


def _make_partial_kernel(alpha: float, tile_rows: int, lanes: int,
                         full_rows: int, rem: int):
    """Per-tile kernel: (tile_rows, lanes) -> (8, lanes) partial sums."""

    groups = tile_rows // 8
    k_acc = 1
    for cand in (8, 4, 2):
        if groups % cand == 0:
            k_acc = cand
            break

    def _group_sum(p):
        # Sublane-group sum with k_acc independent accumulator vregs so the
        # add chain is not one long serial dependency.
        if k_acc > 1:
            partial = jnp.sum(p.reshape(groups // k_acc, k_acc * 8, lanes),
                              axis=0)                       # (k_acc*8, lanes)
            return jnp.sum(partial.reshape(k_acc, 8, lanes), axis=0)
        return jnp.sum(p.reshape(groups, 8, lanes), axis=0)

    def kernel(x_ref, o_ref):
        i = pl.program_id(0)
        last = pl.num_programs(0) - 1

        v = x_ref[...].astype(jnp.float32)
        p = _pow_static(v, alpha)

        # Hot path: every tile except the last is fully populated with real
        # data -> no masking at all.
        @pl.when(i != last)
        def _():
            o_ref[...] = _group_sum(p)

        # Cold path: only the last tile can contain Pallas grid padding and/or
        # the <128-element jnp.pad zeros.  Mask by global row (+ lane for the
        # single partial row) -> no large flat-index products, no i32 overflow.
        @pl.when(i == last)
        def _():
            row_ids = lax.broadcasted_iota(jnp.int32, (tile_rows, lanes), 0)
            g_row = i * tile_rows + row_ids
            valid = g_row < full_rows
            if rem:
                lane_ids = lax.broadcasted_iota(jnp.int32, (tile_rows, lanes), 1)
                valid = valid | ((g_row == full_rows) & (lane_ids < rem))
            o_ref[...] = _group_sum(jnp.where(valid, p, jnp.float32(0.0)))

    return kernel


def entropy_layer(x: jax.Array, alpha: float, *,
                  target_tile_bytes: int = 8 * 1024 * 1024,
                  vmem_cap_bytes: int = 48 * 1024 * 1024) -> jax.Array:
    """Rényi entropy: log2(sum(x**alpha)) / (1 - alpha), scalar output."""
    a = float(alpha)
    total = int(x.size)
    itemsize = jnp.dtype(x.dtype).itemsize
    # Native sublane packing: 8 rows (f32), 16 (bf16), 32 (int8/fp8).
    pack = max(8, 32 // itemsize)

    x_flat = jnp.ravel(x)
    full_rows = total // _LANES          # rows fully populated with real data
    rem = total % _LANES
    if rem:
        # NOTE: jnp.pad cannot fuse into pallas_call, so misaligned sizes pay
        # a full-array copy (~2N extra HBM bytes).  The in-kernel mask ignores
        # the pad, so results stay exact.
        # TODO(synk): ragged-tail via pl.ANY + manual flat-chunk DMA to avoid
        # the copy for misaligned inputs.
        x_flat = jnp.pad(x_flat, (0, _LANES - rem))
    rows = x_flat.size // _LANES
    x2d = x_flat.reshape(rows, _LANES)

    def _round_up(n, m):
        return -(-n // m) * m

    rows_up = _round_up(rows, pack)

    # Tile rows from the byte budget, rounded to the packing unit.
    tile_rows = max(pack, target_tile_bytes // (_LANES * itemsize))
    # Keep grid_n >= 2 whenever there is more than one packing unit of rows,
    # so the single "parallel" axis splits across both v7x TensorCores.
    if rows_up > pack:
        half_rows = _round_up(rows_up, 2 * pack) // 2
        tile_rows = min(tile_rows, half_rows)
    tile_rows = _round_up(min(tile_rows, rows_up), pack)

    # VMEM budget: double-buffered input + ~2x tile of f32 elementwise
    # temporaries (upcast / pow) + partial outputs.  Shrink the tile if the
    # budget (plus headroom) would exceed the cap (cap < v7x's 64 MiB VMEM).
    def _vmem_need(tr):
        return (2 * tr * _LANES * itemsize        # double-buffered input
                + 2 * tr * _LANES * 4             # f32 temporaries
                + 2 * 8 * _LANES * 4)             # double-buffered partials
    headroom = 8 * 1024 * 1024
    while tile_rows > pack and _vmem_need(tile_rows) + headroom > vmem_cap_bytes:
        tile_rows = max(pack, _round_up(tile_rows // 2, pack))
    vmem_limit = min(max(_vmem_need(tile_rows) + headroom, 32 * 1024 * 1024),
                     vmem_cap_bytes)

    grid_n = pl.cdiv(rows, tile_rows)

    # Advisory cost hint so XLA can schedule neighbours around the custom call.
    m2 = a * 2.0
    general_alpha = not (m2 == int(m2) and abs(a) <= 16.0) and a not in (0.0, 1.0)
    cost = pl.CostEstimate(
        flops=6 * total,
        transcendentals=(2 * total) if general_alpha else total,
        bytes_accessed=int(x2d.nbytes) + grid_n * 8 * _LANES * 4,
    )

    partials = pl.pallas_call(
        _make_partial_kernel(a, tile_rows, _LANES, full_rows, rem),
        out_shape=jax.ShapeDtypeStruct((grid_n * 8, _LANES), jnp.float32),
        grid_spec=pltpu.PrefetchScalarGridSpec(
            num_scalar_prefetch=0,
            grid=(grid_n,),
            in_specs=[pl.BlockSpec((tile_rows, _LANES), lambda i: (i, 0))],
            out_specs=pl.BlockSpec((8, _LANES), lambda i: (i, 0)),
        ),
        compiler_params=pltpu.CompilerParams(
            dimension_semantics=("parallel",),
            vmem_limit_bytes=vmem_limit,
        ),
        cost_estimate=cost,
    )(x2d)

    # Tiny scalar epilogue (sum over grid_n*1024 partials + log2 + scale).
    # NOTE: alpha == 1 gives a 0-division (inf/NaN), matching the naive torch
    # formula; sum <= 0 gives NaN under log2, also matching torch.
    s = jnp.sum(partials, dtype=jnp.float32)
    out = jnp.log2(s) / (1.0 - a)
    if jnp.issubdtype(x.dtype, jnp.floating):
        return out.astype(x.dtype)
    return out  # integer inputs: return f32 scalar (torch promotes under log2)


class EntropyLayer:
    """Mirror of torch _EntropyLayer (no parameters)."""

    def __init__(self, alpha):
        self.alpha = float(alpha)

    def __call__(self, x):
        return entropy_layer(x, self.alpha)


if __name__ == "__main__":
    key = jax.random.PRNGKey(0)
    x = jax.random.normal(key, (2, 4, 16, 16), dtype=jnp.float32)  # NCHW
    alpha = 2.0

    layer = EntropyLayer(alpha)
    y = layer(x)
    jax.block_until_ready(y)

    # Reference: x**alpha -> sum -> log2 -> /(1-alpha)
    ref = jnp.log2(jnp.sum(x ** alpha)) / (1.0 - alpha)

    assert y.shape == (), f"expected scalar, got {y.shape}"
    assert y.dtype == x.dtype
    assert jnp.allclose(y, ref, rtol=1e-5, atol=1e-5), (y, ref)

    # Also exercise a non-integer alpha fast path (0.5 -> sqrt) on positive data.
    x_pos = jnp.abs(x) + 0.1
    y2 = entropy_layer(x_pos, 0.5)
    ref2 = jnp.log2(jnp.sum(x_pos ** 0.5)) / (1.0 - 0.5)
    assert jnp.allclose(y2, ref2, rtol=1e-5, atol=1e-5), (y2, ref2)

    print("KERNEL_OK")
</pallas_src>

<mosaic_0001>
module attributes {stable_mosaic.version = 11 : i64} {
  func.func @kernel(%arg0: i32, %arg1: memref<8x128xf32, #tpu.memory_space<vmem>>, %arg2: memref<8x128xf32, #tpu.memory_space<vmem>>) attributes {dimension_semantics = [#tpu.dimension_semantics<parallel>], iteration_bounds = array<i64: 2>, scalar_prefetch = 0 : i64, scratch_operands = 0 : i64, tpu.core_type = #tpu.core_type<tc>, window_params = [{transform_indices = @transform_0, window_bounds = array<i64: 8, 128>}, {transform_indices = @transform_1, window_bounds = array<i64: 8, 128>}]} {
    %c0 = arith.constant 0 : index
    %c0_0 = arith.constant 0 : index
    %0 = vector.load %arg1[%c0, %c0_0] : memref<8x128xf32, #tpu.memory_space<vmem>>, vector<8x128xf32>
    %1 = arith.mulf %0, %0 : vector<8x128xf32>
    %c1_i32 = arith.constant 1 : i32
    %2 = arith.cmpi ne, %arg0, %c1_i32 : i32
    %3 = arith.extui %2 : i1 to i32
    %c0_i32 = arith.constant 0 : i32
    %4 = arith.cmpi ne, %3, %c0_i32 : i32
    scf.if %4 {
      %8 = vector.shape_cast %1 : vector<8x128xf32> to vector<1x8x128xf32>
      %cst = arith.constant dense<0.000000e+00> : vector<8x128xf32>
      %9 = vector.multi_reduction <add>, %8, %cst [0] : vector<1x8x128xf32> to vector<8x128xf32>
      %c0_3 = arith.constant 0 : index
      %c0_4 = arith.constant 0 : index
      %10 = vector.load %arg2[%c0_3, %c0_4] : memref<8x128xf32, #tpu.memory_space<vmem>>, vector<8x128xf32>
      tpu.vector_store %arg2[%c0_3, %c0_4], %9 {strides = array<i32>} : memref<8x128xf32, #tpu.memory_space<vmem>>, vector<8x128xf32>,
    } else {
    }
    %c1_i32_1 = arith.constant 1 : i32
    %5 = arith.cmpi eq, %arg0, %c1_i32_1 : i32
    %6 = arith.extui %5 : i1 to i32
    %c0_i32_2 = arith.constant 0 : i32
    %7 = arith.cmpi ne, %6, %c0_i32_2 : i32
    scf.if %7 {
      %8 = tpu.iota {dimensions = array<i32: 0>} : vector<8x128xi32>
      %c8_i32 = arith.constant 8 : i32
      %9 = arith.muli %arg0, %c8_i32 : i32
      %10 = vector.broadcast %9 : i32 to vector<8x128xi32>
      %11 = arith.addi %10, %8 : vector<8x128xi32>
      %c16_i32 = arith.constant 16 : i32
      %12 = vector.broadcast %c16_i32 : i32 to vector<8x128xi32>
      %13 = arith.cmpi slt, %11, %12 : vector<8x128xi32>
      %cst = arith.constant 0.000000e+00 : f32
      %14 = vector.broadcast %cst : f32 to vector<8x128xf32>
      %15 = arith.select %13, %1, %14 : vector<8x128xi1>, vector<8x128xf32>
      %16 = vector.shape_cast %15 : vector<8x128xf32> to vector<1x8x128xf32>
      %cst_3 = arith.constant dense<0.000000e+00> : vector<8x128xf32>
      %17 = vector.multi_reduction <add>, %16, %cst_3 [0] : vector<1x8x128xf32> to vector<8x128xf32>
      %c0_4 = arith.constant 0 : index
      %c0_5 = arith.constant 0 : index
      %18 = vector.load %arg2[%c0_4, %c0_5] : memref<8x128xf32, #tpu.memory_space<vmem>>, vector<8x128xf32>
      tpu.vector_store %arg2[%c0_4, %c0_5], %17 {strides = array<i32>} : memref<8x128xf32, #tpu.memory_space<vmem>>, vector<8x128xf32>,
    } else {
    }
    return
  }
  func.func @transform_0(%arg0: i32) -> (i32, i32) {
    %c0_i32 = arith.constant 0 : i32
    %c0_i32_0 = arith.constant 0 : i32
    return %arg0, %c0_i32 : i32, i32
  }
  func.func @transform_1(%arg0: i32) -> (i32, i32) {
    %c0_i32 = arith.constant 0 : i32
    %c0_i32_0 = arith.constant 0 : i32
    return %arg0, %c0_i32 : i32, i32
  }
}

</mosaic_0001>

<bundles_post_ra>
// kernel: tpu_custom_call.1
= control target key start
LH: loop header
LB: loop body
LE: loop exit
PB: predicated region body
PF: predicated region fallthrough
CT: control target
= control target key end

     0   :  { %6 = vsyncpa [#allocation3], 0  ;;  %s569_s0 = inlined_call_operand.hbm [shape: f32[16,128], index: 0, kind: input, shape index: {}]   ;;  %s570_s1 = inlined_call_operand.hbm [shape: f32[16,128], index: 1, kind: output, shape index: {}]  }
   0x1   :  { %8 = vsyncpa [#allocation3 + $0x1], 0 }
   0x2   :  { %9 = vsyncpa [#allocation4], 0 }
   0x3   :  { %11 = vsyncpa [#allocation4 + $0x1], 0  ;;  %s408_s6 = smov 0   ;;  %s410_s7 = smov 0  }
   0x4   :  { %s412_s8 = smov 0   ;;  %s414_s9 = smov 0  }
   0x5 LB: > { %s429_s10 = sadd.s32 4294967295, %s394_s9   ;;  %s237_s11 = sadd.s32 4294967294, %s394_s9   ;;  %s394_s9 = sphi %s414_s9, %s587_s9   ;;  %s390_s8 = sphi %s412_s8, %s586_s8   ;;  %s386_s7 = sphi %s410_s7, %s585_s7   ;;  %s382_s6 = sphi %s408_s6, %s584_s6  }
   0x6   : > { %s433_s12 = sadd.s32 1, %s394_s9   ;;  %s24_s13 = sadd.s32 1, %s390_s8 }
   0x7   : > { %s21_s14 = ssub.s32 %s394_s9, %s433_s12  ;;  %p31_p0 = scmp.ne.s32.totalorder %s390_s8, %s386_s7 }
   0x8   : > { %p22_p1 = scmp.eq.s32.totalorder %s21_s14, 0  ;;  %p32_p2 = scmp.eq.s32.totalorder %s394_s9, 0 }
   0x9   : > { %p37_p3 = scmp.ne.s32.totalorder %s386_s7, %s382_s6  ;;  %p38_p4 = scmp.eq.s32.totalorder %s429_s10, 0 }
   0xa   : > { %s445_s15 = scalar_select %p22_p1, %s390_s8, %s24_s13  }
   0xb   : > { %p447_p5 = por %p32_p2, %p31_p0  ;;  %p451_p6 = por %p38_p4, %p37_p3 }
   0xc   : > { %p571_p7 = scmp.eq.s32.totalorder %s429_s10, 1  ;;  %p67_p8 = scmp.eq.s32.totalorder %s237_s11, 1 }
   0xd   : > { %p264_p10 = scmp.lt.s32.totalorder %s394_s9, 2  ;;  %s87_s20 = sand.u32 1, %s390_s8  }
   0xe   : > { %p460_p11 = por %p571_p7, %p31_p0  ;;  %p464_p12 = por %p67_p8, %p37_p3 }
   0xf   : > { %s241_s21 = sshll.u32 %s394_s9, 7  ;;  %s240_s22 = sshll.u32 %s87_s20, 3 }
  0x10   : > { %s575_s18 = scalar_select %p460_p11, 1, 0 }
  0x11   : > { %s576_s19 = scalar_select %p464_p12, 1, 0 }
  0x12   : > { %s473_s25 = scalar_lea.hbm %s569_s0, %s241_s21  ;;  %s91_s26 = scalar_lea.vmem [#allocation2], %s240_s22 }
  0x13   : > { %s98_s27 = sshll.u32 %s91_s26, 4  ;;  %p477_p13 = pnand %p264_p10, %p447_p5  ;;  %s481_s27 = int_to_ptr.vmem [resolvable:$true] %s98_s27 }
  0x14   : > { %s88_s29 = scalar_lea.sflag [#allocation3], %s87_s20  ;;  %s298_s30 = scalar_lea.hbm %s473_s25, 128 }
  0x15   : > { %p299_p2 = scmp.ne.s32.totalorder %s473_s25, %s298_s30  ;;  %p300_p3 = pneg %p477_p13 }
  0x16   : > { %s303_s4 = scalar_lea.hbm %s569_s0, 256  ;;  %p304_p5 = scmp.lt.u32.totalorder %s473_s25, %s569_s0 }
  0x17   : > { %p301_p4 = pnand %p300_p3, %p299_p2  ;;  %p305_p10 = scmp.lt.u32.totalorder %s303_s4, %s298_s30 }
  0x18   : > { %p307_p7 = scmp.lt.u32.totalorder %s298_s30, %s473_s25 }
  0x19   : > { %p302_p8 = pneg %p301_p4  ;;  %p306_p9 = por %p305_p10, %p304_p5 }
  0x1b   : > { %p308_p0 = por %p307_p7, %p306_p9 }
  0x1d   : > { %p309_p1 = pnand %p308_p0, %p302_p8 }
  0x1f   : > { %312 = shalt.err (!%p309_p1)
}
  0x20   : > { %s313_s13 = scalar_lea.vmem %s481_s27, 128  ;;  %s396_s14 = smov [#allocation2]  }
  0x21   : > { %p314_p2 = scmp.ne.s32.totalorder %s481_s27, %s313_s13  ;;  %s318_s16 = sshll.u32 %s396_s14, 4  ;;  %s319_s16 = int_to_ptr.vmem [resolvable:$false] %s318_s16 }
  0x22   : > { %s320_s20 = scalar_lea.vmem %s319_s16, 256  ;;  %p321_p11 = scmp.lt.s32.totalorder %s481_s27, %s319_s16 }
  0x23   : > { %p316_p4 = pnand %p314_p2, %p300_p3  ;;  %p322_p5 = scmp.lt.s32.totalorder %s320_s20, %s313_s13 }
  0x25   : > { %p317_p12 = pneg %p316_p4  ;;  %p323_p10 = por %p322_p5, %p321_p11 }
  0x27   : > { %p324_p7 = pnand %p323_p10, %p317_p12 }
  0x29   : > { %327 = shalt.err (!%p324_p7)
}
  0x2a   : > { %259 = dma.hbm_to_vmem [thread:$0]  (!%p477_p13), %s473_s25, 128, %s481_s27, %s88_s29  }
  0x2b   : > { %p578_p9 = scmp.lt.s32.totalorder %s394_s9, 3  ;;  %p579_p0 = scmp.ge.s32.totalorder %s394_s9, 1 }
  0x2d   : > { %p104_p1 = pnand %p579_p0, %p578_p9 }
  0x2e   : > { %s515_s21 = sand.u32 (!%p104_p1), 1, %s386_s7  }
  0x2f   : > { %107 = sbr.rel (%p104_p1) target bundleno = 99 (0x63), region = 24  ;;  %s243_s22 = sshll.u32 (!%p104_p1), %s515_s21, 3 }
  0x30   : > { %s110_s23 = scalar_lea.sflag (!%p104_p1), [#allocation3], %s515_s21  ;;  %s113_s24 = scalar_lea.vmem (!%p104_p1), [#allocation2], %s243_s22 }
  0x36   : > { %373 = dma.done.wait (%p451_p6), %s110_s23, 128  }
  0x37   : > { %375 = vsyncadd (%p451_p6), %s110_s23, 4294967168  ;;  %v132_v0 = vld [vmem:[%s113_s24] sm:$0xff]  ;;  %s131_s25 = scalar_lea.vmem [#allocation5], %s243_s22  ;;  %p580_p11 = scmp.eq.s32.totalorder %s429_s10, 1 }
  0x38   : > { %v133_v1 = vmul.f32 %v132_v0, %v132_v0 }
  0x39   : > { %137 = sbr.rel (%p580_p11) target bundleno = 64 (0x40), region = 32 }
  0x3a   : > { %139 = vst [vmem:[%s131_s25] sm:$0xff] (!%p580_p11), %v133_v1 }
  0x40 PF: > { %p246_p12 = scmp.ne.s32.totalorder %s429_s10, 1 }
  0x41   : > { %v144_v2 = vlaneseq (!%p246_p12)  ;;  %s247_s26 = sshll.u32 (!%p246_p12), %s429_s10, 3 }
  0x42   : > { %143 = sbr.rel (%p246_p12) target bundleno = 74 (0x4a), region = 36  ;;  %v147_v3 = vstv (!%p246_p12), %s247_s26 }
  0x43   : > { %v145_v4 = vshrl.u32 (!%p246_p12), %v144_v2, 7 }
  0x45   : > { %v148_v5 = vadd.s32 (!%p246_p12), %v147_v3, %v145_v4 }
  0x47   : > { %vm149_vm0 = vcmp.lt.s32.totalorder (!%p246_p12), %v148_v5, 16 }
  0x48   : > { %v150_v6 = vsel (!%p246_p12), %vm149_vm0, %v133_v1, 0.0 }
  0x49   : > { %152 = vst [vmem:[%s131_s25] sm:$0xff] %v150_v6 }
  0x4a PF: > { %s249_s17 = sshll.u32 %s429_s10, 7  ;;  %s167_s30 = sshll.u32 %s131_s25, 4  ;;  %s168_s30 = int_to_ptr.vmem [resolvable:$true] %s167_s30 }
  0x4b   : > { %s531_s29 = scalar_lea.hbm %s570_s1, %s249_s17  ;;  %s154_s2 = scalar_lea.sflag [#allocation4], %s515_s21 }
  0x4c   : > { %s328_s3 = scalar_lea.vmem %s168_s30, 128  ;;  %p581_p13 = scmp.ne.s32.totalorder %s575_s18, 0 }
  0x4d   : > { %p329_p6 = scmp.ne.s32.totalorder %s168_s30, %s328_s3  ;;  %s397_s4 = smov [#allocation5]  }
  0x4e   : > { %s332_s5 = sshll.u32 %s397_s4, 4  ;;  %s333_s5 = int_to_ptr.vmem [resolvable:$false] %s332_s5 }
  0x4f   : > { %p330_p3 = pnand %p329_p6, %p581_p13  ;;  %s334_s11 = scalar_lea.vmem %s333_s5, 256 }
  0x50   : > { %p335_p2 = scmp.lt.s32.totalorder %s168_s30, %s333_s5  ;;  %p336_p4 = scmp.lt.s32.totalorder %s334_s11, %s328_s3 }
  0x51   : > { %p331_p8 = pneg %p330_p3 }
  0x52   : > { %p337_p5 = por %p336_p4, %p335_p2 }
  0x54   : > { %p338_p10 = pnand %p337_p5, %p331_p8 }
  0x56   : > { %341 = shalt.err (!%p338_p10)
}
  0x57   : > { %s342_s10 = scalar_lea.hbm %s531_s29, 128  ;;  %s346_s16 = scalar_lea.hbm %s570_s1, 256 }
  0x58   : > { %p343_p7 = scmp.ne.s32.totalorder %s531_s29, %s342_s10  ;;  %p347_p1 = scmp.lt.u32.totalorder %s531_s29, %s570_s1 }
  0x59   : > { %p348_p11 = scmp.lt.u32.totalorder %s346_s16, %s342_s10  ;;  %p350_p6 = scmp.lt.u32.totalorder %s342_s10, %s531_s29 }
  0x5a   : > { %p344_p9 = pnand %p343_p7, %p581_p13 }
  0x5b   : > { %p349_p12 = por %p348_p11, %p347_p1 }
  0x5c   : > { %p345_p0 = pneg %p344_p9 }
  0x5d   : > { %p351_p3 = por %p350_p6, %p349_p12 }
  0x5f   : > { %p352_p8 = pnand %p351_p3, %p345_p0 }
  0x61   : > { %355 = shalt.err (!%p352_p8)
}
  0x62   : > { %254 = dma.vmem_to_hbm [thread:$0]  (%p581_p13), %s168_s30, 128, %s531_s29, %s154_s2  }
  0x63 PF: > { %s179_s22 = sand.u32 1, %s382_s6   ;;  %p582_p2 = scmp.ne.s32.totalorder %s576_s19, 0 }
  0x64   : > { %p583_p4 = scmp.ge.s32.totalorder %s394_s9, 2  ;;  %s180_s23 = scalar_lea.sflag [#allocation4], %s179_s22 }
  0x66   : > { %p261_p5 = pnand %p583_p4, %p582_p2 }
  0x68   : > { %377 = dma.done.wait (!%p261_p5), %s180_s23, 128  }
  0x69   : > { %379 = vsyncadd (!%p261_p5), %s180_s23, 4294967168  ;;  %p14_p10 = scmp.ge.s32.totalorder %s433_s12, 4   ;;  %s584_s6 = smov %s386_s7 }
  0x6a   : > { %s585_s7 = smov %s390_s8  ;;  %s586_s8 = smov %s445_s15 }
  0x6b   : > { %s587_s9 = smov %s433_s12  ;;  %16 = sbr.rel (!%p14_p10) target bundleno = 5 (0x5), region = 77 }
  0x72   :  { %185 = vsyncpa [#allocation3], 1 }
  0x73   :  { %187 = vsyncpa [#allocation3 + $0x1], 1 }
  0x74   :  { %188 = vsyncpa [#allocation4], 1 }
  0x75   :  { %190 = vsyncpa [#allocation4 + $0x1], 1 }

</bundles_post_ra>
